<compile_context>
chip_gen: v7x
topology: tpu7x:2x2x1
jax: 0.10.0
libtpu: 0.0.40
codegen_flags: <defaults>
</compile_context>

<pallas_src>
import jax
import jax.numpy as jnp
from jax import lax
from jax.experimental import pallas as pl
from jax.experimental.pallas import tpu as pltpu


def _round_up(x, m):
    return ((x + m - 1) // m) * m


# ----------------------------- Pallas kernel --------------------------------

def _fused_conv_kernel(x_ref, w1_ref, b1_ref, w2_ref, b2_ref, o_ref):
    # One grid step = one batch element x one row of layer-2 output windows.
    #
    # x_ref : (1, 16, Wo2, 16*Cin)  input row strip; dim1 = 4*kh2 + kh1,
    #                               lanes = (4*kw2 + kw1)*Cin + c (free NHWC reshape)
    # w1_ref: (4, 16*Cin, 4*C1p)    per-kh1 weight, block-diagonal over kw2 so the
    #                               dot's output lanes are already (kw2, c1) grouped
    # b1_ref: (1, 4*C1p)            layer-1 bias tiled over kw2
    # w2_ref: (16*C1p, C2p)         layer-2 weight, rows ordered (kh2, kw2, c1)
    # b2_ref: (1, C2p)
    # o_ref : (1, Wo2, C2p)         lane-dense output block
    wo2 = o_ref.shape[1]
    c1p4 = b1_ref.shape[1]                        # 4 * C1p

    # ---- layer 1: 16 accumulated MXU dots (4 kh2-groups x 4 kh1 rows) ----
    pieces = []
    for kh2 in range(4):                          # static unroll
        z = jnp.zeros((wo2, c1p4), jnp.float32)
        for kh1 in range(4):                      # static unroll
            z = z + jnp.dot(x_ref[0, 4 * kh2 + kh1], w1_ref[kh1],
                            preferred_element_type=jnp.float32)
        pieces.append(jnp.maximum(z + b1_ref[...], 0.0))

    # ---- layer 2: single matmul over the lane-concatenated layer-1 activation ----
    g = jnp.concatenate(pieces, axis=-1)          # (Wo2, 16*C1p), never leaves vregs
    y = jnp.dot(g, w2_ref[...], preferred_element_type=jnp.float32)
    o_ref[0] = jnp.maximum(y + b2_ref[...], 0.0).astype(o_ref.dtype)


# ------------------------------- Glue (JAX) ---------------------------------

def _prep_params(w1, b1, w2, b2, c1p, c2p):
    """PyTorch OIHW conv weights -> matmul layouts matched to the kernel."""
    c1, cin = w1.shape[0], w1.shape[1]
    c2 = w2.shape[0]

    # Layer 1: (C1, Cin, kh1, kw1) -> per-kh1 (4*Cin, C1p), then block-diagonal over
    # kw2 so  (row strip) @ W1B  emits lanes ordered (kw2, c1).
    w1t = jnp.transpose(w1, (2, 3, 1, 0)).reshape(4, 4 * cin, c1)   # (kh1, (kw1,c), c1)
    w1t = jnp.pad(w1t, ((0, 0), (0, 0), (0, c1p - c1)))
    eye4 = jnp.eye(4, dtype=w1.dtype)
    w1b = jnp.einsum("ab,hkc->hakbc", eye4, w1t).reshape(4, 16 * cin, 4 * c1p)
    b1t = jnp.tile(jnp.pad(b1, (0, c1p - c1)), 4).reshape(1, 4 * c1p)

    # Layer 2: (C2, C1, kh2, kw2) -> rows ordered (kh2, kw2, c1), cols padded to C2p.
    w2t = jnp.transpose(w2, (2, 3, 1, 0))                           # (kh2, kw2, C1, C2)
    w2t = jnp.pad(w2t, ((0, 0), (0, 0), (0, c1p - c1), (0, c2p - c2)))
    w2m = w2t.reshape(16 * c1p, c2p)
    b2p = jnp.pad(b2, (0, c2p - c2)).reshape(1, c2p)
    return w1b, b1t, w2m, b2p


def global_conv_net(x_nchw, params):
    """Fused forward of GlobalConvNet: conv(4,4)+ReLU -> conv(4,4)+ReLU. NCHW in/out."""
    (w1, b1), (w2, b2) = params
    n, cin, h, w = x_nchw.shape
    assert h % 16 == 0 and w % 16 == 0, "fused kernel needs H, W divisible by 16"
    ho2, wo2 = h // 16, w // 16
    c1, c2 = w1.shape[0], w2.shape[0]
    c1p = _round_up(c1, 8)          # sublane quantum only; no 128x zero padding
    c2p = _round_up(c2, 128)        # lane-dense output store
    k1 = 16 * cin                   # lanes of one input strip row = (kw2, kw1, c)

    w1b, b1t, w2m, b2p = _prep_params(w1, b1, w2, b2, c1p, c2p)

    # Boundary transpose to NHWC, then a FREE row-major reshape into 16-row strips:
    # x_r[g = n*Ho2 + p, hl, q_w, (4*kw2 + kw1)*Cin + c] = x[n, 16p+hl, 16q_w+4kw2+kw1, c]
    xh = jnp.transpose(x_nchw, (0, 2, 3, 1))
    xr = xh.reshape(n * ho2, 16, wo2, k1)

    out = pl.pallas_call(
        _fused_conv_kernel,
        out_shape=jax.ShapeDtypeStruct((n * ho2, wo2, c2p), jnp.float32),
        grid=(n * ho2,),
        in_specs=[
            pl.BlockSpec((1, 16, wo2, k1), lambda g: (g, 0, 0, 0)),
            pl.BlockSpec((4, k1, 4 * c1p), lambda g: (0, 0, 0)),
            pl.BlockSpec((1, 4 * c1p), lambda g: (0, 0)),
            pl.BlockSpec((16 * c1p, c2p), lambda g: (0, 0)),
            pl.BlockSpec((1, c2p), lambda g: (0, 0)),
        ],
        out_specs=pl.BlockSpec((1, wo2, c2p), lambda g: (g, 0, 0)),
        compiler_params=pltpu.CompilerParams(
            dimension_semantics=("parallel",),
        ),
    )(xr, w1b, b1t, w2m, b2p)

    out = out[:, :, :c2].reshape(n, ho2, wo2, c2)       # drop lane padding
    return jnp.transpose(out, (0, 3, 1, 2))             # NHWC -> NCHW at boundary only


def init_params(key, in_chan, out_chan):
    k1, k2, k3, k4 = jax.random.split(key, 4)
    fan = in_chan * 4 * 4
    bound = 1.0 / jnp.sqrt(fan)
    w1 = jax.random.uniform(k1, (in_chan, in_chan, 4, 4), jnp.float32, -bound, bound)
    b1 = jax.random.uniform(k2, (in_chan,), jnp.float32, -bound, bound)
    w2 = jax.random.uniform(k3, (out_chan, in_chan, 4, 4), jnp.float32, -bound, bound)
    b2 = jax.random.uniform(k4, (out_chan,), jnp.float32, -bound, bound)
    return (w1, b1), (w2, b2)


# Pure-JAX reference (lax conv) for the correctness check.
def _ref_forward(x_nchw, params):
    out = x_nchw
    for w, b in params:
        out = lax.conv_general_dilated(
            out, w, window_strides=(4, 4), padding="VALID",
            dimension_numbers=("NCHW", "OIHW", "NCHW"))
        out = jnp.maximum(out + b.reshape(1, -1, 1, 1), 0.0)
    return out


if __name__ == "__main__":
    key = jax.random.PRNGKey(0)
    kx, kp = jax.random.split(key)

    in_chan, out_chan = 4, 8
    x = jax.random.normal(kx, (2, in_chan, 16, 16), dtype=jnp.float32)  # NCHW
    params = init_params(kp, in_chan, out_chan)

    y = jax.jit(global_conv_net)(x, params)
    y = jax.block_until_ready(y)

    y_ref = _ref_forward(x, params)
    assert y.shape == (2, out_chan, 1, 1), y.shape
    assert jnp.allclose(y, y_ref, atol=1e-4, rtol=1e-5), float(jnp.max(jnp.abs(y - y_ref)))

    print("KERNEL_OK")
</pallas_src>

<mosaic_0001>
module attributes {stable_mosaic.version = 11 : i64} {
  func.func @_fused_conv_kernel(%arg0: i32, %arg1: memref<1x16x1x64xf32, #tpu.memory_space<vmem>>, %arg2: memref<4x64x32xf32, #tpu.memory_space<vmem>>, %arg3: memref<1x32xf32, #tpu.memory_space<vmem>>, %arg4: memref<128x128xf32, #tpu.memory_space<vmem>>, %arg5: memref<1x128xf32, #tpu.memory_space<vmem>>, %arg6: memref<1x1x128xf32, #tpu.memory_space<vmem>>) attributes {dimension_semantics = [#tpu.dimension_semantics<parallel>], iteration_bounds = array<i64: 2>, scalar_prefetch = 0 : i64, scratch_operands = 0 : i64, tpu.core_type = #tpu.core_type<tc>, window_params = [{transform_indices = @transform_0, window_bounds = array<i64: 1, 16, 1, 64>}, {pipeline_mode = #tpu.pipeline_mode<synchronous>, transform_indices = @transform_1, window_bounds = array<i64: 4, 64, 32>}, {pipeline_mode = #tpu.pipeline_mode<synchronous>, transform_indices = @transform_2, window_bounds = array<i64: 1, 32>}, {pipeline_mode = #tpu.pipeline_mode<synchronous>, transform_indices = @transform_3, window_bounds = array<i64: 128, 128>}, {pipeline_mode = #tpu.pipeline_mode<synchronous>, transform_indices = @transform_4, window_bounds = array<i64: 1, 128>}, {transform_indices = @transform_5, window_bounds = array<i64: 1, 1, 128>}]} {
    %cst = arith.constant 0.000000e+00 : f32
    %0 = vector.broadcast %cst : f32 to vector<1x32xf32>
    %c0 = arith.constant 0 : index
    %c0_0 = arith.constant 0 : index
    %c0_1 = arith.constant 0 : index
    %c0_2 = arith.constant 0 : index
    %1 = vector.load %arg1[%c0, %c0_0, %c0_1, %c0_2] : memref<1x16x1x64xf32, #tpu.memory_space<vmem>>, vector<1x1x1x64xf32>
    %2 = vector.shape_cast %1 : vector<1x1x1x64xf32> to vector<1x64xf32>
    %c0_3 = arith.constant 0 : index
    %c0_4 = arith.constant 0 : index
    %c0_5 = arith.constant 0 : index
    %3 = vector.load %arg2[%c0_3, %c0_4, %c0_5] : memref<4x64x32xf32, #tpu.memory_space<vmem>>, vector<1x64x32xf32>
    %4 = vector.shape_cast %3 : vector<1x64x32xf32> to vector<64x32xf32>
    %cst_6 = arith.constant dense<0.000000e+00> : vector<1x32xf32>
    %5 = tpu.matmul %2, %4, %cst_6 {dimension_numbers = #tpu.dot_dimension_numbers<[1], [0], [0], [1], [0, 0, 1, 1], [], []>} : vector<1x64xf32>, vector<64x32xf32>, vector<1x32xf32> -> vector<1x32xf32>
    %6 = arith.addf %0, %5 : vector<1x32xf32>
    %c0_7 = arith.constant 0 : index
    %c1 = arith.constant 1 : index
    %c0_8 = arith.constant 0 : index
    %c0_9 = arith.constant 0 : index
    %7 = vector.load %arg1[%c0_7, %c1, %c0_8, %c0_9] : memref<1x16x1x64xf32, #tpu.memory_space<vmem>>, vector<1x1x1x64xf32>
    %8 = vector.shape_cast %7 : vector<1x1x1x64xf32> to vector<1x64xf32>
    %c1_10 = arith.constant 1 : index
    %c0_11 = arith.constant 0 : index
    %c0_12 = arith.constant 0 : index
    %9 = vector.load %arg2[%c1_10, %c0_11, %c0_12] : memref<4x64x32xf32, #tpu.memory_space<vmem>>, vector<1x64x32xf32>
    %10 = vector.shape_cast %9 : vector<1x64x32xf32> to vector<64x32xf32>
    %cst_13 = arith.constant dense<0.000000e+00> : vector<1x32xf32>
    %11 = tpu.matmul %8, %10, %cst_13 {dimension_numbers = #tpu.dot_dimension_numbers<[1], [0], [0], [1], [0, 0, 1, 1], [], []>} : vector<1x64xf32>, vector<64x32xf32>, vector<1x32xf32> -> vector<1x32xf32>
    %12 = arith.addf %6, %11 : vector<1x32xf32>
    %c0_14 = arith.constant 0 : index
    %c2 = arith.constant 2 : index
    %c0_15 = arith.constant 0 : index
    %c0_16 = arith.constant 0 : index
    %13 = vector.load %arg1[%c0_14, %c2, %c0_15, %c0_16] : memref<1x16x1x64xf32, #tpu.memory_space<vmem>>, vector<1x1x1x64xf32>
    %14 = vector.shape_cast %13 : vector<1x1x1x64xf32> to vector<1x64xf32>
    %c2_17 = arith.constant 2 : index
    %c0_18 = arith.constant 0 : index
    %c0_19 = arith.constant 0 : index
    %15 = vector.load %arg2[%c2_17, %c0_18, %c0_19] : memref<4x64x32xf32, #tpu.memory_space<vmem>>, vector<1x64x32xf32>
    %16 = vector.shape_cast %15 : vector<1x64x32xf32> to vector<64x32xf32>
    %cst_20 = arith.constant dense<0.000000e+00> : vector<1x32xf32>
    %17 = tpu.matmul %14, %16, %cst_20 {dimension_numbers = #tpu.dot_dimension_numbers<[1], [0], [0], [1], [0, 0, 1, 1], [], []>} : vector<1x64xf32>, vector<64x32xf32>, vector<1x32xf32> -> vector<1x32xf32>
    %18 = arith.addf %12, %17 : vector<1x32xf32>
    %c0_21 = arith.constant 0 : index
    %c3 = arith.constant 3 : index
    %c0_22 = arith.constant 0 : index
    %c0_23 = arith.constant 0 : index
    %19 = vector.load %arg1[%c0_21, %c3, %c0_22, %c0_23] : memref<1x16x1x64xf32, #tpu.memory_space<vmem>>, vector<1x1x1x64xf32>
    %20 = vector.shape_cast %19 : vector<1x1x1x64xf32> to vector<1x64xf32>
    %c3_24 = arith.constant 3 : index
    %c0_25 = arith.constant 0 : index
    %c0_26 = arith.constant 0 : index
    %21 = vector.load %arg2[%c3_24, %c0_25, %c0_26] : memref<4x64x32xf32, #tpu.memory_space<vmem>>, vector<1x64x32xf32>
    %22 = vector.shape_cast %21 : vector<1x64x32xf32> to vector<64x32xf32>
    %cst_27 = arith.constant dense<0.000000e+00> : vector<1x32xf32>
    %23 = tpu.matmul %20, %22, %cst_27 {dimension_numbers = #tpu.dot_dimension_numbers<[1], [0], [0], [1], [0, 0, 1, 1], [], []>} : vector<1x64xf32>, vector<64x32xf32>, vector<1x32xf32> -> vector<1x32xf32>
    %24 = arith.addf %18, %23 : vector<1x32xf32>
    %c0_28 = arith.constant 0 : index
    %c0_29 = arith.constant 0 : index
    %25 = vector.load %arg3[%c0_28, %c0_29] : memref<1x32xf32, #tpu.memory_space<vmem>>, vector<1x32xf32>
    %26 = arith.addf %24, %25 : vector<1x32xf32>
    %cst_30 = arith.constant 0.000000e+00 : f32
    %27 = vector.broadcast %cst_30 : f32 to vector<1x32xf32>
    %28 = arith.maximumf %26, %27 : vector<1x32xf32>
    %cst_31 = arith.constant 0.000000e+00 : f32
    %29 = vector.broadcast %cst_31 : f32 to vector<1x32xf32>
    %c0_32 = arith.constant 0 : index
    %c4 = arith.constant 4 : index
    %c0_33 = arith.constant 0 : index
    %c0_34 = arith.constant 0 : index
    %30 = vector.load %arg1[%c0_32, %c4, %c0_33, %c0_34] : memref<1x16x1x64xf32, #tpu.memory_space<vmem>>, vector<1x1x1x64xf32>
    %31 = vector.shape_cast %30 : vector<1x1x1x64xf32> to vector<1x64xf32>
    %c0_35 = arith.constant 0 : index
    %c0_36 = arith.constant 0 : index
    %c0_37 = arith.constant 0 : index
    %32 = vector.load %arg2[%c0_35, %c0_36, %c0_37] : memref<4x64x32xf32, #tpu.memory_space<vmem>>, vector<1x64x32xf32>
    %33 = vector.shape_cast %32 : vector<1x64x32xf32> to vector<64x32xf32>
    %cst_38 = arith.constant dense<0.000000e+00> : vector<1x32xf32>
    %34 = tpu.matmul %31, %33, %cst_38 {dimension_numbers = #tpu.dot_dimension_numbers<[1], [0], [0], [1], [0, 0, 1, 1], [], []>} : vector<1x64xf32>, vector<64x32xf32>, vector<1x32xf32> -> vector<1x32xf32>
    %35 = arith.addf %29, %34 : vector<1x32xf32>
    %c0_39 = arith.constant 0 : index
    %c5 = arith.constant 5 : index
    %c0_40 = arith.constant 0 : index
    %c0_41 = arith.constant 0 : index
    %36 = vector.load %arg1[%c0_39, %c5, %c0_40, %c0_41] : memref<1x16x1x64xf32, #tpu.memory_space<vmem>>, vector<1x1x1x64xf32>
    %37 = vector.shape_cast %36 : vector<1x1x1x64xf32> to vector<1x64xf32>
    %c1_42 = arith.constant 1 : index
    %c0_43 = arith.constant 0 : index
    %c0_44 = arith.constant 0 : index
    %38 = vector.load %arg2[%c1_42, %c0_43, %c0_44] : memref<4x64x32xf32, #tpu.memory_space<vmem>>, vector<1x64x32xf32>
    %39 = vector.shape_cast %38 : vector<1x64x32xf32> to vector<64x32xf32>
    %cst_45 = arith.constant dense<0.000000e+00> : vector<1x32xf32>
    %40 = tpu.matmul %37, %39, %cst_45 {dimension_numbers = #tpu.dot_dimension_numbers<[1], [0], [0], [1], [0, 0, 1, 1], [], []>} : vector<1x64xf32>, vector<64x32xf32>, vector<1x32xf32> -> vector<1x32xf32>
    %41 = arith.addf %35, %40 : vector<1x32xf32>
    %c0_46 = arith.constant 0 : index
    %c6 = arith.constant 6 : index
    %c0_47 = arith.constant 0 : index
    %c0_48 = arith.constant 0 : index
    %42 = vector.load %arg1[%c0_46, %c6, %c0_47, %c0_48] : memref<1x16x1x64xf32, #tpu.memory_space<vmem>>, vector<1x1x1x64xf32>
    %43 = vector.shape_cast %42 : vector<1x1x1x64xf32> to vector<1x64xf32>
    %c2_49 = arith.constant 2 : index
    %c0_50 = arith.constant 0 : index
    %c0_51 = arith.constant 0 : index
    %44 = vector.load %arg2[%c2_49, %c0_50, %c0_51] : memref<4x64x32xf32, #tpu.memory_space<vmem>>, vector<1x64x32xf32>
    %45 = vector.shape_cast %44 : vector<1x64x32xf32> to vector<64x32xf32>
    %cst_52 = arith.constant dense<0.000000e+00> : vector<1x32xf32>
    %46 = tpu.matmul %43, %45, %cst_52 {dimension_numbers = #tpu.dot_dimension_numbers<[1], [0], [0], [1], [0, 0, 1, 1], [], []>} : vector<1x64xf32>, vector<64x32xf32>, vector<1x32xf32> -> vector<1x32xf32>
    %47 = arith.addf %41, %46 : vector<1x32xf32>
    %c0_53 = arith.constant 0 : index
    %c7 = arith.constant 7 : index
    %c0_54 = arith.constant 0 : index
    %c0_55 = arith.constant 0 : index
    %48 = vector.load %arg1[%c0_53, %c7, %c0_54, %c0_55] : memref<1x16x1x64xf32, #tpu.memory_space<vmem>>, vector<1x1x1x64xf32>
    %49 = vector.shape_cast %48 : vector<1x1x1x64xf32> to vector<1x64xf32>
    %c3_56 = arith.constant 3 : index
    %c0_57 = arith.constant 0 : index
    %c0_58 = arith.constant 0 : index
    %50 = vector.load %arg2[%c3_56, %c0_57, %c0_58] : memref<4x64x32xf32, #tpu.memory_space<vmem>>, vector<1x64x32xf32>
    %51 = vector.shape_cast %50 : vector<1x64x32xf32> to vector<64x32xf32>
    %cst_59 = arith.constant dense<0.000000e+00> : vector<1x32xf32>
    %52 = tpu.matmul %49, %51, %cst_59 {dimension_numbers = #tpu.dot_dimension_numbers<[1], [0], [0], [1], [0, 0, 1, 1], [], []>} : vector<1x64xf32>, vector<64x32xf32>, vector<1x32xf32> -> vector<1x32xf32>
    %53 = arith.addf %47, %52 : vector<1x32xf32>
    %c0_60 = arith.constant 0 : index
    %c0_61 = arith.constant 0 : index
    %54 = vector.load %arg3[%c0_60, %c0_61] : memref<1x32xf32, #tpu.memory_space<vmem>>, vector<1x32xf32>
    %55 = arith.addf %53, %54 : vector<1x32xf32>
    %cst_62 = arith.constant 0.000000e+00 : f32
    %56 = vector.broadcast %cst_62 : f32 to vector<1x32xf32>
    %57 = arith.maximumf %55, %56 : vector<1x32xf32>
    %cst_63 = arith.constant 0.000000e+00 : f32
    %58 = vector.broadcast %cst_63 : f32 to vector<1x32xf32>
    %c0_64 = arith.constant 0 : index
    %c8 = arith.constant 8 : index
    %c0_65 = arith.constant 0 : index
    %c0_66 = arith.constant 0 : index
    %59 = vector.load %arg1[%c0_64, %c8, %c0_65, %c0_66] : memref<1x16x1x64xf32, #tpu.memory_space<vmem>>, vector<1x1x1x64xf32>
    %60 = vector.shape_cast %59 : vector<1x1x1x64xf32> to vector<1x64xf32>
    %c0_67 = arith.constant 0 : index
    %c0_68 = arith.constant 0 : index
    %c0_69 = arith.constant 0 : index
    %61 = vector.load %arg2[%c0_67, %c0_68, %c0_69] : memref<4x64x32xf32, #tpu.memory_space<vmem>>, vector<1x64x32xf32>
    %62 = vector.shape_cast %61 : vector<1x64x32xf32> to vector<64x32xf32>
    %cst_70 = arith.constant dense<0.000000e+00> : vector<1x32xf32>
    %63 = tpu.matmul %60, %62, %cst_70 {dimension_numbers = #tpu.dot_dimension_numbers<[1], [0], [0], [1], [0, 0, 1, 1], [], []>} : vector<1x64xf32>, vector<64x32xf32>, vector<1x32xf32> -> vector<1x32xf32>
    %64 = arith.addf %58, %63 : vector<1x32xf32>
    %c0_71 = arith.constant 0 : index
    %c9 = arith.constant 9 : index
    %c0_72 = arith.constant 0 : index
    %c0_73 = arith.constant 0 : index
    %65 = vector.load %arg1[%c0_71, %c9, %c0_72, %c0_73] : memref<1x16x1x64xf32, #tpu.memory_space<vmem>>, vector<1x1x1x64xf32>
    %66 = vector.shape_cast %65 : vector<1x1x1x64xf32> to vector<1x64xf32>
    %c1_74 = arith.constant 1 : index
    %c0_75 = arith.constant 0 : index
    %c0_76 = arith.constant 0 : index
    %67 = vector.load %arg2[%c1_74, %c0_75, %c0_76] : memref<4x64x32xf32, #tpu.memory_space<vmem>>, vector<1x64x32xf32>
    %68 = vector.shape_cast %67 : vector<1x64x32xf32> to vector<64x32xf32>
    %cst_77 = arith.constant dense<0.000000e+00> : vector<1x32xf32>
    %69 = tpu.matmul %66, %68, %cst_77 {dimension_numbers = #tpu.dot_dimension_numbers<[1], [0], [0], [1], [0, 0, 1, 1], [], []>} : vector<1x64xf32>, vector<64x32xf32>, vector<1x32xf32> -> vector<1x32xf32>
    %70 = arith.addf %64, %69 : vector<1x32xf32>
    %c0_78 = arith.constant 0 : index
    %c10 = arith.constant 10 : index
    %c0_79 = arith.constant 0 : index
    %c0_80 = arith.constant 0 : index
    %71 = vector.load %arg1[%c0_78, %c10, %c0_79, %c0_80] : memref<1x16x1x64xf32, #tpu.memory_space<vmem>>, vector<1x1x1x64xf32>
    %72 = vector.shape_cast %71 : vector<1x1x1x64xf32> to vector<1x64xf32>
    %c2_81 = arith.constant 2 : index
    %c0_82 = arith.constant 0 : index
    %c0_83 = arith.constant 0 : index
    %73 = vector.load %arg2[%c2_81, %c0_82, %c0_83] : memref<4x64x32xf32, #tpu.memory_space<vmem>>, vector<1x64x32xf32>
    %74 = vector.shape_cast %73 : vector<1x64x32xf32> to vector<64x32xf32>
    %cst_84 = arith.constant dense<0.000000e+00> : vector<1x32xf32>
    %75 = tpu.matmul %72, %74, %cst_84 {dimension_numbers = #tpu.dot_dimension_numbers<[1], [0], [0], [1], [0, 0, 1, 1], [], []>} : vector<1x64xf32>, vector<64x32xf32>, vector<1x32xf32> -> vector<1x32xf32>
    %76 = arith.addf %70, %75 : vector<1x32xf32>
    %c0_85 = arith.constant 0 : index
    %c11 = arith.constant 11 : index
    %c0_86 = arith.constant 0 : index
    %c0_87 = arith.constant 0 : index
    %77 = vector.load %arg1[%c0_85, %c11, %c0_86, %c0_87] : memref<1x16x1x64xf32, #tpu.memory_space<vmem>>, vector<1x1x1x64xf32>
    %78 = vector.shape_cast %77 : vector<1x1x1x64xf32> to vector<1x64xf32>
    %c3_88 = arith.constant 3 : index
    %c0_89 = arith.constant 0 : index
    %c0_90 = arith.constant 0 : index
    %79 = vector.load %arg2[%c3_88, %c0_89, %c0_90] : memref<4x64x32xf32, #tpu.memory_space<vmem>>, vector<1x64x32xf32>
    %80 = vector.shape_cast %79 : vector<1x64x32xf32> to vector<64x32xf32>
    %cst_91 = arith.constant dense<0.000000e+00> : vector<1x32xf32>
    %81 = tpu.matmul %78, %80, %cst_91 {dimension_numbers = #tpu.dot_dimension_numbers<[1], [0], [0], [1], [0, 0, 1, 1], [], []>} : vector<1x64xf32>, vector<64x32xf32>, vector<1x32xf32> -> vector<1x32xf32>
    %82 = arith.addf %76, %81 : vector<1x32xf32>
    %c0_92 = arith.constant 0 : index
    %c0_93 = arith.constant 0 : index
    %83 = vector.load %arg3[%c0_92, %c0_93] : memref<1x32xf32, #tpu.memory_space<vmem>>, vector<1x32xf32>
    %84 = arith.addf %82, %83 : vector<1x32xf32>
    %cst_94 = arith.constant 0.000000e+00 : f32
    %85 = vector.broadcast %cst_94 : f32 to vector<1x32xf32>
    %86 = arith.maximumf %84, %85 : vector<1x32xf32>
    %cst_95 = arith.constant 0.000000e+00 : f32
    %87 = vector.broadcast %cst_95 : f32 to vector<1x32xf32>
    %c0_96 = arith.constant 0 : index
    %c12 = arith.constant 12 : index
    %c0_97 = arith.constant 0 : index
    %c0_98 = arith.constant 0 : index
    %88 = vector.load %arg1[%c0_96, %c12, %c0_97, %c0_98] : memref<1x16x1x64xf32, #tpu.memory_space<vmem>>, vector<1x1x1x64xf32>
    %89 = vector.shape_cast %88 : vector<1x1x1x64xf32> to vector<1x64xf32>
    %c0_99 = arith.constant 0 : index
    %c0_100 = arith.constant 0 : index
    %c0_101 = arith.constant 0 : index
    %90 = vector.load %arg2[%c0_99, %c0_100, %c0_101] : memref<4x64x32xf32, #tpu.memory_space<vmem>>, vector<1x64x32xf32>
    %91 = vector.shape_cast %90 : vector<1x64x32xf32> to vector<64x32xf32>
    %cst_102 = arith.constant dense<0.000000e+00> : vector<1x32xf32>
    %92 = tpu.matmul %89, %91, %cst_102 {dimension_numbers = #tpu.dot_dimension_numbers<[1], [0], [0], [1], [0, 0, 1, 1], [], []>} : vector<1x64xf32>, vector<64x32xf32>, vector<1x32xf32> -> vector<1x32xf32>
    %93 = arith.addf %87, %92 : vector<1x32xf32>
    %c0_103 = arith.constant 0 : index
    %c13 = arith.constant 13 : index
    %c0_104 = arith.constant 0 : index
    %c0_105 = arith.constant 0 : index
    %94 = vector.load %arg1[%c0_103, %c13, %c0_104, %c0_105] : memref<1x16x1x64xf32, #tpu.memory_space<vmem>>, vector<1x1x1x64xf32>
    %95 = vector.shape_cast %94 : vector<1x1x1x64xf32> to vector<1x64xf32>
    %c1_106 = arith.constant 1 : index
    %c0_107 = arith.constant 0 : index
    %c0_108 = arith.constant 0 : index
    %96 = vector.load %arg2[%c1_106, %c0_107, %c0_108] : memref<4x64x32xf32, #tpu.memory_space<vmem>>, vector<1x64x32xf32>
    %97 = vector.shape_cast %96 : vector<1x64x32xf32> to vector<64x32xf32>
    %cst_109 = arith.constant dense<0.000000e+00> : vector<1x32xf32>
    %98 = tpu.matmul %95, %97, %cst_109 {dimension_numbers = #tpu.dot_dimension_numbers<[1], [0], [0], [1], [0, 0, 1, 1], [], []>} : vector<1x64xf32>, vector<64x32xf32>, vector<1x32xf32> -> vector<1x32xf32>
    %99 = arith.addf %93, %98 : vector<1x32xf32>
    %c0_110 = arith.constant 0 : index
    %c14 = arith.constant 14 : index
    %c0_111 = arith.constant 0 : index
    %c0_112 = arith.constant 0 : index
    %100 = vector.load %arg1[%c0_110, %c14, %c0_111, %c0_112] : memref<1x16x1x64xf32, #tpu.memory_space<vmem>>, vector<1x1x1x64xf32>
    %101 = vector.shape_cast %100 : vector<1x1x1x64xf32> to vector<1x64xf32>
    %c2_113 = arith.constant 2 : index
    %c0_114 = arith.constant 0 : index
    %c0_115 = arith.constant 0 : index
    %102 = vector.load %arg2[%c2_113, %c0_114, %c0_115] : memref<4x64x32xf32, #tpu.memory_space<vmem>>, vector<1x64x32xf32>
    %103 = vector.shape_cast %102 : vector<1x64x32xf32> to vector<64x32xf32>
    %cst_116 = arith.constant dense<0.000000e+00> : vector<1x32xf32>
    %104 = tpu.matmul %101, %103, %cst_116 {dimension_numbers = #tpu.dot_dimension_numbers<[1], [0], [0], [1], [0, 0, 1, 1], [], []>} : vector<1x64xf32>, vector<64x32xf32>, vector<1x32xf32> -> vector<1x32xf32>
    %105 = arith.addf %99, %104 : vector<1x32xf32>
    %c0_117 = arith.constant 0 : index
    %c15 = arith.constant 15 : index
    %c0_118 = arith.constant 0 : index
    %c0_119 = arith.constant 0 : index
    %106 = vector.load %arg1[%c0_117, %c15, %c0_118, %c0_119] : memref<1x16x1x64xf32, #tpu.memory_space<vmem>>, vector<1x1x1x64xf32>
    %107 = vector.shape_cast %106 : vector<1x1x1x64xf32> to vector<1x64xf32>
    %c3_120 = arith.constant 3 : index
    %c0_121 = arith.constant 0 : index
    %c0_122 = arith.constant 0 : index
    %108 = vector.load %arg2[%c3_120, %c0_121, %c0_122] : memref<4x64x32xf32, #tpu.memory_space<vmem>>, vector<1x64x32xf32>
    %109 = vector.shape_cast %108 : vector<1x64x32xf32> to vector<64x32xf32>
    %cst_123 = arith.constant dense<0.000000e+00> : vector<1x32xf32>
    %110 = tpu.matmul %107, %109, %cst_123 {dimension_numbers = #tpu.dot_dimension_numbers<[1], [0], [0], [1], [0, 0, 1, 1], [], []>} : vector<1x64xf32>, vector<64x32xf32>, vector<1x32xf32> -> vector<1x32xf32>
    %111 = arith.addf %105, %110 : vector<1x32xf32>
    %c0_124 = arith.constant 0 : index
    %c0_125 = arith.constant 0 : index
    %112 = vector.load %arg3[%c0_124, %c0_125] : memref<1x32xf32, #tpu.memory_space<vmem>>, vector<1x32xf32>
    %113 = arith.addf %111, %112 : vector<1x32xf32>
    %cst_126 = arith.constant 0.000000e+00 : f32
    %114 = vector.broadcast %cst_126 : f32 to vector<1x32xf32>
    %115 = arith.maximumf %113, %114 : vector<1x32xf32>
    %116 = tpu.concatenate %28, %57, %86, %115 in 1 : vector<1x32xf32>, vector<1x32xf32>, vector<1x32xf32>, vector<1x32xf32> -> vector<1x128xf32>
    %c0_127 = arith.constant 0 : index
    %c0_128 = arith.constant 0 : index
    %117 = vector.load %arg4[%c0_127, %c0_128] : memref<128x128xf32, #tpu.memory_space<vmem>>, vector<128x128xf32>
    %cst_129 = arith.constant dense<0.000000e+00> : vector<1x128xf32>
    %118 = tpu.matmul %116, %117, %cst_129 {dimension_numbers = #tpu.dot_dimension_numbers<[1], [0], [0], [1], [0, 0, 1, 1], [], []>} : vector<1x128xf32>, vector<128x128xf32>, vector<1x128xf32> -> vector<1x128xf32>
    %c0_130 = arith.constant 0 : index
    %c0_131 = arith.constant 0 : index
    %119 = vector.load %arg5[%c0_130, %c0_131] : memref<1x128xf32, #tpu.memory_space<vmem>>, vector<1x128xf32>
    %120 = arith.addf %118, %119 : vector<1x128xf32>
    %cst_132 = arith.constant 0.000000e+00 : f32
    %121 = vector.broadcast %cst_132 : f32 to vector<1x128xf32>
    %122 = arith.maximumf %120, %121 : vector<1x128xf32>
    %c0_133 = arith.constant 0 : index
    %c0_134 = arith.constant 0 : index
    %c0_135 = arith.constant 0 : index
    %123 = vector.load %arg6[%c0_133, %c0_134, %c0_135] : memref<1x1x128xf32, #tpu.memory_space<vmem>>, vector<1x1x128xf32>
    %124 = vector.shape_cast %123 : vector<1x1x128xf32> to vector<1x128xf32>
    %125 = vector.shape_cast %122 : vector<1x128xf32> to vector<1x1x128xf32>
    tpu.vector_store %arg6[%c0_133, %c0_134, %c0_135], %125 {strides = array<i32>} : memref<1x1x128xf32, #tpu.memory_space<vmem>>, vector<1x1x128xf32>,
    return
  }
  func.func @transform_0(%arg0: i32) -> (i32, i32, i32, i32) {
    %c0_i32 = arith.constant 0 : i32
    %c0_i32_0 = arith.constant 0 : i32
    %c0_i32_1 = arith.constant 0 : i32
    %c0_i32_2 = arith.constant 0 : i32
    return %arg0, %c0_i32, %c0_i32_0, %c0_i32_1 : i32, i32, i32, i32
  }
  func.func @transform_1(%arg0: i32) -> (i32, i32, i32) {
    %c0_i32 = arith.constant 0 : i32
    %c0_i32_0 = arith.constant 0 : i32
    %c0_i32_1 = arith.constant 0 : i32
    %c0_i32_2 = arith.constant 0 : i32
    return %c0_i32, %c0_i32_0, %c0_i32_1 : i32, i32, i32
  }
  func.func @transform_2(%arg0: i32) -> (i32, i32) {
    %c0_i32 = arith.constant 0 : i32
    %c0_i32_0 = arith.constant 0 : i32
    %c0_i32_1 = arith.constant 0 : i32
    return %c0_i32, %c0_i32_0 : i32, i32
  }
  func.func @transform_3(%arg0: i32) -> (i32, i32) {
    %c0_i32 = arith.constant 0 : i32
    %c0_i32_0 = arith.constant 0 : i32
    %c0_i32_1 = arith.constant 0 : i32
    return %c0_i32, %c0_i32_0 : i32, i32
  }
  func.func @transform_4(%arg0: i32) -> (i32, i32) {
    %c0_i32 = arith.constant 0 : i32
    %c0_i32_0 = arith.constant 0 : i32
    %c0_i32_1 = arith.constant 0 : i32
    return %c0_i32, %c0_i32_0 : i32, i32
  }
  func.func @transform_5(%arg0: i32) -> (i32, i32, i32) {
    %c0_i32 = arith.constant 0 : i32
    %c0_i32_0 = arith.constant 0 : i32
    %c0_i32_1 = arith.constant 0 : i32
    return %arg0, %c0_i32, %c0_i32_0 : i32, i32, i32
  }
}

</mosaic_0001>

<bundles_post_ra>
// kernel: tile.8
= control target key start
LH: loop header
LB: loop body
LE: loop exit
PB: predicated region body
PF: predicated region fallthrough
CT: control target
= control target key end

     0   :  { %s22_s0 = inlined_call_operand.vmem [shape: f32[8], index: 0, kind: input, shape index: {}]   ;;  %s23_s1 = inlined_call_operand.vmem [shape: f32[4,8], index: 1, kind: output, shape index: {}]  }
   0x1   :  { %v4_v0 = vld [vmem:[%s22_s0] ss:$0 sm:$0xff] }
   0x2   :  { %5 = vst [vmem:[%s23_s1] sm:$0xf] %v4_v0 }

// kernel: tile.9
= control target key start
LH: loop header
LB: loop body
LE: loop exit
PB: predicated region body
PF: predicated region fallthrough
CT: control target
= control target key end

     0   :  { %vm7_vm0 = vcmask 64512   ;;  %s37_s8 = smov 8   ;;  %s38_s9 = smov 16   ;;  %vm13_vm1 = vcmask 261312   ;;  %vm19_vm2 = vcmask 195712   ;;  %vm25_vm3 = vcmask 130112   ;;  %s55_s0 = inlined_call_operand.vmem [shape: f32[4,8], index: 0, kind: input, shape index: {}]   ;;  %s56_s1 = inlined_call_operand.vmem [shape: f32[1,32], index: 1, kind: output, shape index: {}]  }
   0x1   :  { %v4_v0 = vld [vmem:[%s55_s0] sm:$0xf]  ;;  %s36_s0 = smov 24  }
   0x2   :  { %5 = vst [vmem:[#allocation1] sm:$0xf] %v4_v0 }
   0x9   :  { %v10_v1 = vld [vmem:[#allocation1 + $0x3] sm:$0x1]   ;;  %v22_v2 = vld [vmem:[#allocation1 + $0x1] sm:$0x1]   ;;  %v6_v3 = vld [vmem:[#allocation1] sm:$0x1]  }
   0xa   :  { %11 = vrot.lane.b32.xlu0 %v10_v1, %s36_s0  ;;  %23 = vrot.lane.b32.xlu1 %v22_v2, %s37_s8  ;;  %v16_v4 = vld [vmem:[#allocation1 + $0x2] sm:$0x1]   ;;  %8 = vst.msk [vmem:[#allocation0] sm:$0x1] %vm7_vm0, %v6_v3  }
   0xe   :  { %17 = vrot.lane.b32.xlu0 %v16_v4, %s38_s9 }
  0x7c   :  { %v12_v5 = vpop.permute.xlu0 %11   ;;  %v24_v6 = vpop.permute.xlu1 %23  }
  0x7d   :  { %14 = vst.msk [vmem:[#allocation0] sm:$0x1] %vm13_vm1, %v12_v5  }
  0x80   :  { %v18_v7 = vpop.permute.xlu0 %17  }
  0x81   :  { %20 = vst.msk [vmem:[#allocation0] sm:$0x1] %vm19_vm2, %v18_v7  }
  0x82   :  { %26 = vst.msk [vmem:[#allocation0] sm:$0x1] %vm25_vm3, %v24_v6  }
  0x89   :  { %v30_v8 = vld [vmem:[#allocation0] sm:$0x1] }
  0x8a   :  { %32 = vst [vmem:[%s56_s1] sm:$0x1] %v30_v8 }

// kernel: global_conv_net.1
= control target key start
LH: loop header
LB: loop body
LE: loop exit
PB: predicated region body
PF: predicated region fallthrough
CT: control target
= control target key end

     0   :  { %s2460_s18 = smov 0   ;;  %s2877_s0 = inlined_call_operand.vmem [shape: f32[2,16,1,64], index: 0, kind: input, shape index: {}]   ;;  %s2878_s1 = inlined_call_operand.vmem [shape: f32[4,64,32], index: 1, kind: input, shape index: {}]   ;;  %s2879_s2 = inlined_call_operand.vmem [shape: f32[1,32], index: 2, kind: input, shape index: {}]   ;;  %s2880_s3 = inlined_call_operand.vmem [shape: f32[128,128], index: 3, kind: input, shape index: {}]   ;;  %s2881_s4 = inlined_call_operand.vmem [shape: f32[1,128], index: 4, kind: input, shape index: {}]   ;;  %s2882_s5 = inlined_call_operand.vmem [shape: f32[2,1,128], index: 5, kind: output, shape index: {}]  }
   0x1 LB: > { %s1623_s19 = sadd.s32 4294967295, %s2422_s18   ;;  %p1627_p0 = scmp.ge.s32.totalorder %s2422_s18, 1  ;;  %s2422_s18 = sphi %s2460_s18, %s15_s18  }
   0x2   : > { %p186_p1 = scmp.lt.s32.totalorder %s2422_s18, 3 }
   0x4   : > { %p187_p2 = pnand %p1627_p0, %p186_p1 }
   0x5   : > { %v1630_v0 = vld [vmem:[%s2878_s1 + $0x40] sm:$0xff] (!%p187_p2)  ;;  %v1631_v1 = vld [vmem:[%s2878_s1 + $0x48] sm:$0xff] (!%p187_p2)  ;;  %v1632_v2 = vld [vmem:[%s2878_s1 + $0x50] sm:$0xff] (!%p187_p2)  ;;  %v2424_v3 = vmov (!%p187_p2), 0.0|0.0   ;;  %vm2425_vm0 = vmmov (!%p187_p2), 0   ;;  %v2426_v6 = vmov (!%p187_p2), 0.0  }
   0x6   : > { %190 = sbr.rel (%p187_p2) target bundleno = 702 (0x2be), region = 40  ;;  %2186 = vmatprep.subr.bf16.mxu1 (!%p187_p2), %v2424_v3  ;;  %v2478_v4 = vpack.c.bf16 (!%p187_p2), %v1631_v1, %v1630_v0  ;;  %v1633_v5 = vld [vmem:[%s2878_s1 + $0x58] sm:$0xff] (!%p187_p2)  ;;  %1863 = vmatprep.mubr.msk.f32.mxu1 (!%p187_p2), %vm2425_vm0, %v2426_v6  ;;  %p211_p3 = scmp.lt.s32.totalorder (!%p187_p2), %s1623_s19, 1  ;;  %v1641_v8 = vld [vmem:[%s2878_s1 + $0x80] sm:$0xff] (!%p187_p2)  ;;  %v1642_v9 = vld [vmem:[%s2878_s1 + $0x88] sm:$0xff] (!%p187_p2)  ;;  %vm238_vm1 = vcmask (!%p187_p2), 523264  }
   0x7   : > { %2210 = vmatprep.subr.bf16.mxu0 (!%p187_p2), %v2424_v3  ;;  %1901 = vmatprep.mubr.msk.f32.mxu0 (!%p187_p2), %vm2425_vm0, %v2426_v6  ;;  %v2489_v7 = vpack.c.bf16 (!%p187_p2), %v1633_v5, %v1632_v2  ;;  %v1634_v10 = vld [vmem:[%s2878_s1 + $0x60] sm:$0xff] (!%p187_p2)  ;;  %v1635_v11 = vld [vmem:[%s2878_s1 + $0x68] sm:$0xff] (!%p187_p2)  ;;  %v2504_v12 = vpack.c.bf16 (!%p187_p2), %v1642_v9, %v1641_v8  ;;  %v1643_v13 = vld [vmem:[%s2878_s1 + $0x90] sm:$0xff] (!%p187_p2)  ;;  %s2427_s21 = smov (!%p187_p2), 32   ;;  %s2429_s8 = smov (!%p187_p2), 96   ;;  %vm1482_vm2 = vcmask (!%p187_p2), 261120  }
   0x8   : > { %2188 = vmatpush3.bf16.msra.mxu1 (!%p187_p2), %v2478_v4  ;;  %v1644_v14 = vld [vmem:[%s2878_s1 + $0x98] sm:$0xff] (!%p187_p2)  ;;  %v2518_v16 = vpack.c.bf16 (!%p187_p2), %v1635_v11, %v1634_v10  ;;  %v1645_v17 = vld [vmem:[%s2878_s1 + $0xa0] sm:$0xff] (!%p187_p2)  ;;  %v1646_v18 = vld [vmem:[%s2878_s1 + $0xa8] sm:$0xff] (!%p187_p2)  ;;  %vm1485_vm3 = vcmask (!%p187_p2), 785408  }
   0x9   : > { %2189 = vmatprep.subr.bf16.mxu1 (!%p187_p2), %v2424_v3  ;;  %2212 = vmatpush3.bf16.msra.mxu0 (!%p187_p2), %v2504_v12  ;;  %v2515_v15 = vpack.c.bf16 (!%p187_p2), %v1644_v14, %v1643_v13  ;;  %v1636_v19 = vld [vmem:[%s2878_s1 + $0x70] sm:$0xff] (!%p187_p2)  ;;  %v1637_v20 = vld [vmem:[%s2878_s1 + $0x78] sm:$0xff] (!%p187_p2)  ;;  %v2536_v21 = vpack.c.bf16 (!%p187_p2), %v1646_v18, %v1645_v17  ;;  %v219_v25 = vld [vmem:[%s2878_s1] sm:$0xff] (!%p187_p2) }
   0xa   : > { %2213 = vmatprep.subr.bf16.mxu0 (!%p187_p2), %v2424_v3  ;;  %v2539_v22 = vpack.c.bf16 (!%p187_p2), %v1637_v20, %v1636_v19  ;;  %v1647_v23 = vld [vmem:[%s2878_s1 + $0xb0] sm:$0xff] (!%p187_p2)  ;;  %v1648_v24 = vld [vmem:[%s2878_s1 + $0xb8] sm:$0xff] (!%p187_p2)  ;;  %v220_v26 = vld [vmem:[%s2878_s1 + $0x8] sm:$0xff] (!%p187_p2) }
   0xb   : > { %v2561_v27 = vpack.c.bf16 (!%p187_p2), %v1648_v24, %v1647_v23  ;;  %v2565_v29 = vpack.c.bf16 (!%p187_p2), %v220_v26, %v219_v25  ;;  %v221_v30 = vld [vmem:[%s2878_s1 + $0x10] sm:$0xff] (!%p187_p2)  ;;  %v222_v31 = vld [vmem:[%s2878_s1 + $0x18] sm:$0xff] (!%p187_p2)  ;;  %v223_v34 = vld [vmem:[%s2878_s1 + $0x20] sm:$0xff] (!%p187_p2) }
   0xc   : > { %2191 = vmatpush3.bf16.msra.mxu1 (!%p187_p2), %v2489_v7  ;;  %v2579_v33 = vpack.c.bf16 (!%p187_p2), %v222_v31, %v221_v30  ;;  %v224_v35 = vld [vmem:[%s2878_s1 + $0x28] sm:$0xff] (!%p187_p2)  ;;  %v225_v37 = vld [vmem:[%s2878_s1 + $0x30] sm:$0xff] (!%p187_p2)  ;;  %v226_v38 = vld [vmem:[%s2878_s1 + $0x38] sm:$0xff] (!%p187_p2) }
   0xd   : > { %s2884_s19 = smov (!%p211_p3, %s1623_s19), 1  ;;  %2192 = vmatprep.subr.bf16.mxu1 %v2424_v3  ;;  %2215 = vmatpush3.bf16.msra.mxu0 %v2515_v15  ;;  %v2596_v36 = vpack.c.bf16 %v224_v35, %v223_v34  ;;  %v2608_v39 = vpack.c.bf16 %v226_v38, %v225_v37  ;;  %v1651_v40 = vld [vmem:[%s2878_s1 + $0xc0] sm:$0xff]  ;;  %v1652_v41 = vld [vmem:[%s2878_s1 + $0xc8] sm:$0xff]  ;;  %v1653_v44 = vld [vmem:[%s2878_s1 + $0xd0] sm:$0xff] }
   0xe   : > { %s1628_s25 = sshll.u32 %s2884_s19, 4  ;;  %2216 = vmatprep.subr.bf16.mxu0 %v2424_v3  ;;  %v2621_v43 = vpack.c.bf16 %v1652_v41, %v1651_v40  ;;  %v1654_v45 = vld [vmem:[%s2878_s1 + $0xd8] sm:$0xff]  ;;  %v1655_v48 = vld [vmem:[%s2878_s1 + $0xe0] sm:$0xff]  ;;  %v1656_v49 = vld [vmem:[%s2878_s1 + $0xe8] sm:$0xff]  ;;  %s217_s13 = scalar_lea.vmem %s2882_s5, %s2884_s19 }
   0xf   : > { %s2552_s7 = scalar_lea.vmem %s2877_s0, %s1628_s25  ;;  %v2635_v47 = vpack.c.bf16 %v1654_v45, %v1653_v44  ;;  %v2652_v50 = vpack.c.bf16 %v1656_v49, %v1655_v48  ;;  %v1657_v51 = vld [vmem:[%s2878_s1 + $0xf0] sm:$0xff]  ;;  %v1658_v52 = vld [vmem:[%s2878_s1 + $0xf8] sm:$0xff]  ;;  %v1487_v38 = vld [vmem:[%s2880_s3] sm:$0xff] }
  0x10   : > { %2194 = vmatpush3.bf16.msra.mxu1 %v2518_v16  ;;  %v1629_v28 = vld [vmem:[%s2552_s7 + $0x1] sm:$0x1]  ;;  %v1640_v32 = vld [vmem:[%s2552_s7 + $0x2] sm:$0x1]  ;;  %v218_v42 = vld [vmem:[%s2552_s7] sm:$0x1]  ;;  %v2664_v53 = vpack.c.bf16 %v1658_v52, %v1657_v51 }
  0x11   : > { %2195 = vmatprep.subr.bf16.mxu1 %v2424_v3  ;;  %2218 = vmatpush3.bf16.msra.mxu0 %v2536_v21  ;;  %v1661_v46 = vld [vmem:[%s2552_s7 + $0x5] sm:$0x1]  ;;  %v1650_v54 = vld [vmem:[%s2552_s7 + $0x3] sm:$0x1]  ;;  %v1664_v55 = vld [vmem:[%s2552_s7 + $0x6] sm:$0x1] }
  0x12   : > { %2219 = vmatprep.subr.bf16.mxu0 %v2424_v3  ;;  %v1660_v56 = vld [vmem:[%s2552_s7 + $0x4] sm:$0x1]  ;;  %v1669_v57 = vld [vmem:[%s2552_s7 + $0x9] sm:$0x1]  ;;  %v1666_v58 = vld [vmem:[%s2552_s7 + $0x7] sm:$0x1] }
  0x13   : > { %v1672_v59 = vld [vmem:[%s2552_s7 + $0xa] sm:$0x1]  ;;  %v1668_v60 = vld [vmem:[%s2552_s7 + $0x8] sm:$0x1]  ;;  %v1677_v61 = vld [vmem:[%s2552_s7 + $0xd] sm:$0x1] }
  0x14   : > { %2197 = vmatpush3.bf16.msra.mxu1 %v2539_v22  ;;  %v1674_v62 = vld [vmem:[%s2552_s7 + $0xb] sm:$0x1]  ;;  %v1680_v63 = vld [vmem:[%s2552_s7 + $0xe] sm:$0x1]  ;;  %v1676_v0 = vld [vmem:[%s2552_s7 + $0xc] sm:$0x1] }
  0x15   : > { %2198 = vmatprep.subr.bf16.mxu1 %v2424_v3  ;;  %2221 = vmatpush3.bf16.msra.mxu0 %v2561_v27  ;;  %v1682_v1 = vld [vmem:[%s2552_s7 + $0xf] sm:$0x1]  ;;  %v1489_v41 = vld [vmem:[%s2880_s3 + $0x10] sm:$0xff]  ;;  %v1491_v44 = vld [vmem:[%s2880_s3 + $0x20] sm:$0xff]  ;;  %s2428_s7 = smov 64  }
  0x16   : > { %2234 = vmatprep.subr.bf16.mxu0 %v2424_v3  ;;  %v1492_v45 = vld [vmem:[%s2880_s3 + $0x28] sm:$0xff]  ;;  %v1494_v51 = vld [vmem:[%s2880_s3 + $0x38] sm:$0xff] }
  0x17   : > { %1864 = vmatmul.mubr.msk.f32.vlgmr.msra.gmra.mrb[0].mxu1 %vm238_vm1, %v1629_v28 }
  0x18   : > { %2200 = vmatpush3.bf16.msra.mxu1 %v2565_v29  ;;  %1882 = vmatprep.mubr.msk.f32.mxu1 %vm2425_vm0, %v2426_v6 }
  0x19   : > { %2201 = vmatprep.subr.bf16.mxu1 %v2424_v3  ;;  %1902 = vmatmul.mubr.msk.f32.vlgmr.msra.gmra.mrb[0].mxu0 %vm238_vm1, %v1640_v32 }
  0x1a   : > { %2236 = vmatpush3.bf16.msra.mxu0 %v2478_v4  ;;  %1939 = vmatprep.mubr.msk.f32.mxu0 %vm2425_vm0, %v2426_v6 }
  0x1b   : > { %2237 = vmatprep.subr.bf16.mxu0 %v2424_v3 }
  0x1c   : > { %2203 = vmatpush3.bf16.msra.mxu1 %v2579_v33 }
  0x1d   : > { %2204 = vmatprep.subr.bf16.mxu1 %v2424_v3 }
  0x1e   : > { %2239 = vmatpush3.bf16.msra.mxu0 %v2489_v7 }
  0x1f   : > { %2240 = vmatprep.subr.bf16.mxu0 %v2424_v3 }
  0x20   : > { %2206 = vmatpush3.bf16.msra.mxu1 %v2596_v36 }
  0x21   : > { %2207 = vmatprep.subr.bf16.mxu1 %v2424_v3 }
  0x22   : > { %2242 = vmatpush3.bf16.msra.mxu0 %v2518_v16 }
  0x23   : > { %2243 = vmatprep.subr.bf16.mxu0 %v2424_v3 }
  0x24   : > { %2209 = vmatpush3.bf16.msra.mxu1 %v2608_v39 }
  0x25   : > { %2222 = vmatprep.subr.bf16.mxu1 %v2424_v3 }
  0x26   : > { %2245 = vmatpush3.bf16.msra.mxu0 %v2539_v22 }
  0x27   : > { %1883 = vmatmul.mubr.msk.f32.vlgmr.msra.gmra.mrb[2].mxu1 %vm238_vm1, %v218_v42  ;;  %2258 = vmatprep.subr.bf16.mxu0 %v2424_v3  ;;  %v1490_v42 = vld [vmem:[%s2880_s3 + $0x18] sm:$0xff] }
  0x28   : > { %2224 = vmatpush3.bf16.msra.mxu1 %v2621_v43  ;;  %1920 = vmatprep.mubr.msk.f32.mxu1 %vm2425_vm0, %v2426_v6 }
  0x29   : > { %2225 = vmatprep.subr.bf16.mxu1 %v2424_v3  ;;  %1940 = vmatmul.mubr.msk.f32.vlgmr.msra.gmra.mrb[2].mxu0 %vm238_vm1, %v1661_v46 }
  0x2a   : > { %2260 = vmatpush3.bf16.msra.mxu0 %v2504_v12  ;;  %1977 = vmatprep.mubr.msk.f32.mxu0 %vm2425_vm0, %v2426_v6 }
  0x2b   : > { %2261 = vmatprep.subr.bf16.mxu0 %v2424_v3 }
  0x2c   : > { %2227 = vmatpush3.bf16.msra.mxu1 %v2635_v47 }
  0x2d   : > { %2228 = vmatprep.subr.bf16.mxu1 %v2424_v3 }
  0x2e   : > { %2263 = vmatpush3.bf16.msra.mxu0 %v2515_v15 }
  0x2f   : > { %2264 = vmatprep.subr.bf16.mxu0 %v2424_v3 }
  0x30   : > { %2230 = vmatpush3.bf16.msra.mxu1 %v2652_v50 }
  0x31   : > { %2231 = vmatprep.subr.bf16.mxu1 %v2424_v3 }
  0x32   : > { %2266 = vmatpush3.bf16.msra.mxu0 %v2536_v21 }
  0x33   : > { %2267 = vmatprep.subr.bf16.mxu0 %v2424_v3 }
  0x34   : > { %2233 = vmatpush3.bf16.msra.mxu1 %v2664_v53 }
  0x35   : > { %2246 = vmatprep.subr.bf16.mxu1 %v2424_v3 }
  0x36   : > { %2269 = vmatpush3.bf16.msra.mxu0 %v2561_v27 }
  0x37   : > { %1921 = vmatmul.mubr.msk.f32.vlgmr.msra.gmra.mrb[4].mxu1 %vm238_vm1, %v1650_v54  ;;  %2282 = vmatprep.subr.bf16.mxu0 %v2424_v3 }
  0x38   : > { %2248 = vmatpush3.bf16.msra.mxu1 %v2565_v29  ;;  %1958 = vmatprep.mubr.msk.f32.mxu1 %vm2425_vm0, %v2426_v6 }
  0x39   : > { %2249 = vmatprep.subr.bf16.mxu1 %v2424_v3  ;;  %1978 = vmatmul.mubr.msk.f32.vlgmr.msra.gmra.mrb[4].mxu0 %vm238_vm1, %v1664_v55 }
  0x3a   : > { %2284 = vmatpush3.bf16.msra.mxu0 %v2478_v4  ;;  %2015 = vmatprep.mubr.msk.f32.mxu0 %vm2425_vm0, %v2426_v6 }
  0x3b   : > { %2285 = vmatprep.subr.bf16.mxu0 %v2424_v3 }
  0x3c   : > { %2251 = vmatpush3.bf16.msra.mxu1 %v2579_v33 }
  0x3d   : > { %2252 = vmatprep.subr.bf16.mxu1 %v2424_v3 }
  0x3e   : > { %2287 = vmatpush3.bf16.msra.mxu0 %v2489_v7 }
  0x3f   : > { %2288 = vmatprep.subr.bf16.mxu0 %v2424_v3 }
  0x40   : > { %2254 = vmatpush3.bf16.msra.mxu1 %v2596_v36 }
  0x41   : > { %2255 = vmatprep.subr.bf16.mxu1 %v2424_v3 }
  0x42   : > { %2290 = vmatpush3.bf16.msra.mxu0 %v2518_v16 }
  0x43   : > { %2291 = vmatprep.subr.bf16.mxu0 %v2424_v3 }
  0x44   : > { %2257 = vmatpush3.bf16.msra.mxu1 %v2608_v39 }
  0x45   : > { %2270 = vmatprep.subr.bf16.mxu1 %v2424_v3 }
  0x46   : > { %2293 = vmatpush3.bf16.msra.mxu0 %v2539_v22 }
  0x47   : > { %1959 = vmatmul.mubr.msk.f32.vlgmr.msra.gmra.mrb[6].mxu1 %vm238_vm1, %v1660_v56  ;;  %2306 = vmatprep.subr.bf16.mxu0 %v2424_v3 }
  0x48   : > { %2272 = vmatpush3.bf16.msra.mxu1 %v2621_v43  ;;  %1996 = vmatprep.mubr.msk.f32.mxu1 %vm2425_vm0, %v2426_v6 }
  0x49   : > { %2273 = vmatprep.subr.bf16.mxu1 %v2424_v3  ;;  %2016 = vmatmul.mubr.msk.f32.vlgmr.msra.gmra.mrb[6].mxu0 %vm238_vm1, %v1669_v57  ;;  %v1495_v57 = vld [vmem:[%s2880_s3 + $0x40] sm:$0xff] }
  0x4a   : > { %2308 = vmatpush3.bf16.msra.mxu0 %v2504_v12  ;;  %2053 = vmatprep.mubr.msk.f32.mxu0 %vm2425_vm0, %v2426_v6 }
  0x4b   : > { %2309 = vmatprep.subr.bf16.mxu0 %v2424_v3 }
  0x4c   : > { %2275 = vmatpush3.bf16.msra.mxu1 %v2635_v47 }
  0x4d   : > { %2276 = vmatprep.subr.bf16.mxu1 %v2424_v3 }
  0x4e   : > { %2311 = vmatpush3.bf16.msra.mxu0 %v2515_v15 }
  0x4f   : > { %2312 = vmatprep.subr.bf16.mxu0 %v2424_v3 }
  0x50   : > { %2278 = vmatpush3.bf16.msra.mxu1 %v2652_v50 }
  0x51   : > { %2279 = vmatprep.subr.bf16.mxu1 %v2424_v3 }
  0x52   : > { %2314 = vmatpush3.bf16.msra.mxu0 %v2536_v21 }
  0x53   : > { %2315 = vmatprep.subr.bf16.mxu0 %v2424_v3 }
  0x54   : > { %2281 = vmatpush3.bf16.msra.mxu1 %v2664_v53 }
  0x55   : > { %2294 = vmatprep.subr.bf16.mxu1 %v2424_v3 }
  0x56   : > { %2317 = vmatpush3.bf16.msra.mxu0 %v2561_v27 }
  0x57   : > { %1997 = vmatmul.mubr.msk.f32.vlgmr.msra.gmra.mrb[8].mxu1 %vm238_vm1, %v1666_v58  ;;  %2330 = vmatprep.subr.bf16.mxu0 %v2424_v3  ;;  %v1496_v58 = vld [vmem:[%s2880_s3 + $0x48] sm:$0xff] }
  0x58   : > { %2296 = vmatpush3.bf16.msra.mxu1 %v2565_v29  ;;  %2034 = vmatprep.mubr.msk.f32.mxu1 %vm2425_vm0, %v2426_v6 }
  0x59   : > { %2297 = vmatprep.subr.bf16.mxu1 %v2424_v3  ;;  %2054 = vmatmul.mubr.msk.f32.vlgmr.msra.gmra.mrb[8].mxu0 %vm238_vm1, %v1672_v59  ;;  %v2391_v59 = vpack.c.bf16 %v1496_v58, %v1495_v57 }
  0x5a   : > { %2332 = vmatpush3.bf16.msra.mxu0 %v2478_v4  ;;  %2091 = vmatprep.mubr.msk.f32.mxu0 %vm2425_vm0, %v2426_v6 }
  0x5b   : > { %2333 = vmatprep.subr.bf16.mxu0 %v2424_v3 }
  0x5c   : > { %2299 = vmatpush3.bf16.msra.mxu1 %v2579_v33 }
  0x5d   : > { %2300 = vmatprep.subr.bf16.mxu1 %v2424_v3 }
  0x5e   : > { %2335 = vmatpush3.bf16.msra.mxu0 %v2489_v7 }
  0x5f   : > { %2336 = vmatprep.subr.bf16.mxu0 %v2424_v3 }
  0x60   : > { %2302 = vmatpush3.bf16.msra.mxu1 %v2596_v36 }
  0x61   : > { %2303 = vmatprep.subr.bf16.mxu1 %v2424_v3 }
  0x62   : > { %2338 = vmatpush3.bf16.msra.mxu0 %v2518_v16 }
  0x63   : > { %2339 = vmatprep.subr.bf16.mxu0 %v2424_v3 }
  0x64   : > { %2305 = vmatpush3.bf16.msra.mxu1 %v2608_v39 }
  0x65   : > { %2318 = vmatprep.subr.bf16.mxu1 %v2424_v3 }
  0x66   : > { %2341 = vmatpush3.bf16.msra.mxu0 %v2539_v22 }
  0x67   : > { %2035 = vmatmul.mubr.msk.f32.vlgmr.msra.gmra.mrb[10].mxu1 %vm238_vm1, %v1668_v60  ;;  %2354 = vmatprep.subr.bf16.mxu0 %v2424_v3  ;;  %v1497_v60 = vld [vmem:[%s2880_s3 + $0x50] sm:$0xff] }
  0x68   : > { %2320 = vmatpush3.bf16.msra.mxu1 %v2621_v43  ;;  %2072 = vmatprep.mubr.msk.f32.mxu1 %vm2425_vm0, %v2426_v6 }
  0x69   : > { %2321 = vmatprep.subr.bf16.mxu1 %v2424_v3  ;;  %2092 = vmatmul.mubr.msk.f32.vlgmr.msra.gmra.mrb[10].mxu0 %vm238_vm1, %v1677_v61  ;;  %v1498_v61 = vld [vmem:[%s2880_s3 + $0x58] sm:$0xff] }
  0x6a   : > { %2356 = vmatpush3.bf16.msra.mxu0 %v2504_v12  ;;  %2129 = vmatprep.mubr.msk.f32.mxu0 %vm2425_vm0, %v2426_v6 }
  0x6b   : > { %2357 = vmatprep.subr.bf16.mxu0 %v2424_v3 }
  0x6c   : > { %2323 = vmatpush3.bf16.msra.mxu1 %v2635_v47 }
  0x6d   : > { %2324 = vmatprep.subr.bf16.mxu1 %v2424_v3 }
  0x6e   : > { %2359 = vmatpush3.bf16.msra.mxu0 %v2515_v15 }
  0x6f   : > { %2360 = vmatprep.subr.bf16.mxu0 %v2424_v3 }
  0x70   : > { %2326 = vmatpush3.bf16.msra.mxu1 %v2652_v50 }
  0x71   : > { %2327 = vmatprep.subr.bf16.mxu1 %v2424_v3 }
  0x72   : > { %2362 = vmatpush3.bf16.msra.mxu0 %v2536_v21 }
  0x73   : > { %2363 = vmatprep.subr.bf16.mxu0 %v2424_v3 }
  0x74   : > { %2329 = vmatpush3.bf16.msra.mxu1 %v2664_v53 }
  0x75   : > { %2342 = vmatprep.subr.bf16.mxu1 %v2424_v3 }
  0x76   : > { %2365 = vmatpush3.bf16.msra.mxu0 %v2561_v27  ;;  %v2804_v27 = vld [vmem:[%s2879_s2] sm:$0x1] }
  0x77   : > { %2073 = vmatmul.mubr.msk.f32.vlgmr.msra.gmra.mrb[12].mxu1 %vm238_vm1, %v1674_v62  ;;  %2378 = vmatprep.subr.bf16.mxu0 %v2424_v3  ;;  %v2394_v62 = vpack.c.bf16 %v1498_v61, %v1497_v60 }
  0x78   : > { %2344 = vmatpush3.bf16.msra.mxu1 %v2565_v29  ;;  %2110 = vmatprep.mubr.msk.f32.mxu1 %vm2425_vm0, %v2426_v6 }
  0x79   : > { %2345 = vmatprep.subr.bf16.mxu1 %v2424_v3  ;;  %2130 = vmatmul.mubr.msk.f32.vlgmr.msra.gmra.mrb[12].mxu0 %vm238_vm1, %v1680_v63  ;;  %v1499_v63 = vld [vmem:[%s2880_s3 + $0x60] sm:$0xff] }
  0x7a   : > { %2183 = vmatprep.mubr.msk.f32.mxu0 %vm2425_vm0, %v2426_v6 }
  0x7c   : > { %2347 = vmatpush3.bf16.msra.mxu1 %v2579_v33 }
  0x7d   : > { %2348 = vmatprep.subr.bf16.mxu1 %v2424_v3 }
  0x80   : > { %2350 = vmatpush3.bf16.msra.mxu1 %v2596_v36 }
  0x81   : > { %2351 = vmatprep.subr.bf16.mxu1 %v2424_v3 }
  0x84   : > { %2353 = vmatpush3.bf16.msra.mxu1 %v2608_v39  ;;  %v1488_v39 = vld [vmem:[%s2880_s3 + $0x8] sm:$0xff] }
  0x85   : > { %2366 = vmatprep.subr.bf16.mxu1 %v2424_v3  ;;  %v2379_v40 = vpack.c.bf16 %v1488_v39, %v1487_v38 }
  0x87   : > { %2111 = vmatmul.mubr.msk.f32.vlgmr.msra.gmra.mrb[14].mxu1 %vm238_vm1, %v1676_v0  ;;  %2380 = vmatpush3.bf16.msra.mxu0 %v2379_v40  ;;  %v1500_v0 = vld [vmem:[%s2880_s3 + $0x68] sm:$0xff] }
  0x88   : > { %2368 = vmatpush3.bf16.msra.mxu1 %v2621_v43  ;;  %2148 = vmatprep.mubr.msk.f32.mxu1 %vm2425_vm0, %v2426_v6  ;;  %v2382_v43 = vpack.c.bf16 %v1490_v42, %v1489_v41 }
  0x89   : > { %2369 = vmatprep.subr.bf16.mxu1 %v2424_v3  ;;  %2381 = vmatprep.subr.bf16.mxu0 %v2424_v3 }
  0x8b   : > { %2383 = vmatpush3.bf16.msra.mxu0 %v2382_v43 }
  0x8c   : > { %2371 = vmatpush3.bf16.msra.mxu1 %v2635_v47  ;;  %v2385_v47 = vpack.c.bf16 %v1492_v45, %v1491_v44  ;;  %2384 = vmatprep.subr.bf16.mxu0 %v2424_v3 }
  0x8d   : > { %2372 = vmatprep.subr.bf16.mxu1 %v2424_v3 }
  0x8f   : > { %2386 = vmatpush3.bf16.msra.mxu0 %v2385_v47 }
  0x90   : > { %2374 = vmatpush3.bf16.msra.mxu1 %v2652_v50  ;;  %v1493_v50 = vld [vmem:[%s2880_s3 + $0x30] sm:$0xff]  ;;  %2387 = vmatprep.subr.bf16.mxu0 %v2424_v3 }
  0x91   : > { %2375 = vmatprep.subr.bf16.mxu1 %v2424_v3  ;;  %v2388_v55 = vpack.c.bf16 %v1494_v51, %v1493_v50 }
  0x93   : > { %2389 = vmatpush3.bf16.msra.mxu0 %v2388_v55 }
  0x94   : > { %2377 = vmatpush3.bf16.msra.mxu1 %v2664_v53  ;;  %2390 = vmatprep.subr.bf16.mxu0 %v2424_v3 }
  0x97   : > { %2149 = vmatmul.mubr.msk.f32.vlgmr.msra.gmra.mrb[16].mxu1 %vm238_vm1, %v1682_v1  ;;  %2392 = vmatpush3.bf16.msra.mxu0 %v2391_v59 }
  0x98   : > { %2393 = vmatprep.subr.bf16.mxu0 %v2424_v3 }
  0x9b   : > { %2395 = vmatpush3.bf16.msra.mxu0 %v2394_v62 }
  0x9c   : > { %2396 = vmatprep.subr.bf16.mxu0 %v2424_v3 }
  0xea   : > { %v308_v2 = vpop.f32.mrb[0].mxu1 }
  0xeb   : > { %v1865_v4 = vpop.f32.mrb[1].mxu1 }
  0xec   : > { %v465_v5 = vpop.f32.mrb[0].mxu0 }
  0xed   : > { %v1903_v7 = vpop.f32.mrb[1].mxu0 }
  0xee   : > { %v1501_v7 = vld [vmem:[%s2880_s3 + $0x70] sm:$0xff] }
  0xfa   : > { %v381_v6 = vpop.f32.mrb[2].mxu1 }
  0xfb   : > { %v382_v8 = vadd.f32 %v381_v6, %v308_v2  ;;  %v1884_v9 = vpop.f32.mrb[3].mxu1  ;;  %v2397_v2 = vpack.c.bf16 %v1500_v0, %v1499_v63  ;;  %v1502_v6 = vld [vmem:[%s2880_s3 + $0x78] sm:$0xff] }
  0xfc   : > { %v631_v11 = vpop.f32.mrb[2].mxu0  ;;  %v2400_v9 = vpack.c.bf16 %v1502_v6, %v1501_v7 }
  0xfd   : > { %v469_v10 = vadd.f32 %v465_v5, %v382_v8  ;;  %v1941_v12 = vpop.f32.mrb[3].mxu0  ;;  %2398 = vmatpush3.bf16.msra.mxu0 %v2397_v2 }
  0xfe   : > { %2399 = vmatprep.subr.bf16.mxu0 %v2424_v3 }
 0x101   : > { %2401 = vmatpush3.bf16.msra.mxu0 %v2400_v9 }
 0x10a   : > { %v550_v13 = vpop.f32.mrb[4].mxu1 }
 0x10b   : > { %v2799_v14 = vadd.f32 %v550_v13, %v469_v10  ;;  %v1922_v15 = vpop.f32.mrb[5].mxu1 }
 0x10c   : > { %v779_v16 = vpop.f32.mrb[4].mxu0 }
 0x10d   : > { %v1979_v17 = vpop.f32.mrb[5].mxu0 }
 0x11a   : > { %v704_v18 = vpop.f32.mrb[6].mxu1 }
 0x11b   : > { %v705_v19 = vadd.f32 %v704_v18, %v631_v11  ;;  %v1960_v20 = vpop.f32.mrb[7].mxu1 }
 0x11c   : > { %v935_v22 = vpop.f32.mrb[6].mxu0 }
 0x11d   : > { %v783_v21 = vadd.f32 %v779_v16, %v705_v19  ;;  %v2017_v23 = vpop.f32.mrb[7].mxu0  ;;  %v556_v16 = vadd.f32 %v2804_v27, %v2799_v14 }
 0x11e   : > { %v1503_v23 = vld [vmem:[%s2881_s4] sm:$0x1] }
 0x11f   : > { %v557_v18 = vmax.f32 %v556_v16, 0.0 }
 0x12a   : > { %v855_v24 = vpop.f32.mrb[8].mxu1 }
 0x12b   : > { %v859_v25 = vadd.f32 %v855_v24, %v783_v21  ;;  %v1998_v26 = vpop.f32.mrb[9].mxu1 }
 0x12c   : > { %v1083_v29 = vpop.f32.mrb[8].mxu0 }
 0x12d   : > { %v860_v28 = vadd.f32 %v859_v25, %v2804_v27  ;;  %v2055_v30 = vpop.f32.mrb[9].mxu0 }
 0x12f   : > { %v861_v31 = vmax.f32 %v860_v28, 0.0 }
 0x131   : > { %1471 = vrot.lane.b32.xlu0 %v861_v31, %s2427_s21 }
 0x13a   : > { %v1008_v32 = vpop.f32.mrb[10].mxu1 }
 0x13b   : > { %v1009_v33 = vadd.f32 %v1008_v32, %v935_v22  ;;  %v2036_v34 = vpop.f32.mrb[11].mxu1 }
 0x13c   : > { %v1239_v36 = vpop.f32.mrb[10].mxu0 }
 0x13d   : > { %v1087_v35 = vadd.f32 %v1083_v29, %v1009_v33  ;;  %v2093_v37 = vpop.f32.mrb[11].mxu0 }
 0x14a   : > { %v1159_v46 = vpop.f32.mrb[12].mxu1 }
 0x14b   : > { %v1163_v48 = vadd.f32 %v1159_v46, %v1087_v35  ;;  %v2074_v49 = vpop.f32.mrb[13].mxu1 }
 0x14c   : > { %v1387_v53 = vpop.f32.mrb[12].mxu0 }
 0x14d   : > { %v1164_v52 = vadd.f32 %v1163_v48, %v2804_v27  ;;  %v2131_v54 = vpop.f32.mrb[13].mxu0 }
 0x14f   : > { %v1165_v56 = vmax.f32 %v1164_v52, 0.0 }
 0x151   : > { %1475 = vrot.lane.b32.xlu0 %v1165_v56, %s2428_s7 }
 0x15a   : > { %v1312_v1 = vpop.f32.mrb[14].mxu1 }
 0x15b   : > { %v1313_v4 = vadd.f32 %v1312_v1, %v1239_v36  ;;  %v2112_v5 = vpop.f32.mrb[15].mxu1 }
 0x15d   : > { %v1391_v8 = vadd.f32 %v1387_v53, %v1313_v4 }
 0x16a   : > { %v1463_v10 = vpop.f32.mrb[16].mxu1 }
 0x16b   : > { %v1467_v11 = vadd.f32 %v1463_v10, %v1391_v8  ;;  %v2150_v12 = vpop.f32.mrb[17].mxu1 }
 0x16d   : > { %v1468_v13 = vadd.f32 %v1467_v11, %v2804_v27 }
 0x16f   : > { %v1469_v15 = vmax.f32 %v1468_v13, 0.0 }
 0x171   : > { %1479 = vrot.lane.b32.xlu1 %v1469_v15, %s2429_s8 }
 0x1a3   : > { %v1472_v17 = vpop.permute.xlu0 %1471 }
 0x1a4   : > { %v1483_v20 = vsel %vm1482_vm2, %v557_v18, %v1472_v17 }
 0x1c3   : > { %v1476_v19 = vpop.permute.xlu0 %1475 }
 0x1c4   : > { %v1484_v3 = vsel %vm238_vm1, %v1483_v20, %v1476_v19 }
 0x1e3   : > { %v1480_v21 = vpop.permute.xlu1 %1479 }
 0x1e4   : > { %v1486_v22 = vsel %vm1485_vm3, %v1484_v3, %v1480_v21 }
 0x1e5   : > { %2184 = vmatmul.mubr.f32.vlgmr.msra.gmra.mrb[14].mxu0 %v1486_v22 }
 0x2b8   : > { %v1570_v24 = vpop.f32.mrb[14].mxu0 }
 0x2b9   : > { %v1571_v25 = vadd.f32 %v1570_v24, %v1503_v23  ;;  %v2185_v26 = vpop.f32.mrb[15].mxu0 }
 0x2bb   : > { %v1574_v14 = vmax.f32 %v1571_v25, 0.0 }
 0x2bd   : > { %1575 = vst [vmem:[%s217_s13] sm:$0x1] %v1574_v14 }
 0x2be PF: > { %s15_s18 = sadd.s32 1, %s2422_s18  }
 0x2bf   : > { %p12_p4 = scmp.ge.s32.totalorder %s15_s18, 4  }
 0x2c1   :  { %14 = sbr.rel (!%p12_p4) target bundleno = 1 (0x1), region = 88 }

</bundles_post_ra>
